<compile_context>
chip_gen: v7x
topology: tpu7x:2x2x1
jax: 0.10.0
libtpu: 0.0.40
codegen_flags: <defaults>
</compile_context>

<pallas_src>
import jax
import jax.numpy as jnp
from jax.experimental import pallas as pl
from jax.experimental.pallas import tpu as pltpu


def _round_up(x, m):
    return (x + m - 1) // m * m


def mlp_kernel(x_ref, w1t_ref, b1_ref, w2t_ref, b2_ref, t_ref, o_ref):
    # First linear: bf16 operands on the MXU, f32 accumulation.
    x_bf = x_ref[...].astype(jnp.bfloat16)          # no-op if x already bf16
    h = jnp.dot(x_bf, w1t_ref[...], preferred_element_type=jnp.float32)
    h = h + b1_ref[...]                             # bias add in f32 (VPU)
    h = jnp.maximum(h, 0.2 * h)                     # LeakyReLU(0.2), one VALU max
    # TODO(synk): training-mode dropout (p=0.1) not implemented; eval-mode
    # (identity) semantics are used.
    # Second linear (bf16 in, f32 accum); the (B,1) time scale is applied
    # AFTER the matmul (row-scale commutes with right-multiplication), so the
    # elementwise multiply touches (TB, OUT) instead of (TB, H).
    y = jnp.dot(h.astype(jnp.bfloat16), w2t_ref[...],
                preferred_element_type=jnp.float32)
    o_ref[...] = (t_ref[...] * y + b2_ref[...]).astype(o_ref.dtype)


def prepare_params(w1, b1, w2, b2):
    """One-time parameter preprocessing (kept out of the per-call hot path).

    w1: (H, IN), b1: (H,), w2: (OUT, H), b2: (OUT,)
    Returns pre-transposed bf16 weights and 2-D f32 biases (native OUT width).
    """
    H, _ = w1.shape
    OUT = w2.shape[0]
    w1t = w1.T.astype(jnp.bfloat16)                  # (IN, H)
    b1_2d = b1.reshape(1, H).astype(jnp.float32)     # (1, H)
    w2t = w2.T.astype(jnp.bfloat16)                  # (H, OUT)  (no lane padding)
    b2_2d = b2.reshape(1, OUT).astype(jnp.float32)   # (1, OUT)
    return (w1t, b1_2d, w2t, b2_2d)


def _pick_batch_tile(B):
    """Batch tile: big tiles amortize the ~0.35us per-grid-step overhead.

    - B <= 256: one grid step covering the whole batch (block == full array
      dim, so any B is legal with no padding).
    - larger B: aim for >= 2 balanced steps (v7x megacore shards rows across
      both TensorCores), capped at 2048 rows/step so double-buffered tiles and
      f32 intermediates stay comfortably inside v5e's 16 MiB scoped-VMEM
      default (no vmem_limit_bytes override needed).
    """
    if B <= 256:
        return B
    return min(2048, _round_up(-(-B // 2), 8))


@jax.jit
def mlp_forward(x, time_given, w1t, b1_2d, w2t, b2_2d):
    B, IN = x.shape
    H = w1t.shape[1]
    OUT = w2t.shape[1]

    TB = _pick_batch_tile(B)
    # Ragged last tile (when TB does not divide B) is handled by Pallas block
    # masking: no wrapper-side jnp.pad and no output slice (each would cost a
    # full extra HBM read+write of the tensor).
    grid = (pl.cdiv(B, TB),)

    return pl.pallas_call(
        mlp_kernel,
        out_shape=jax.ShapeDtypeStruct((B, OUT), jnp.float32),
        grid=grid,
        in_specs=[
            pl.BlockSpec((TB, IN), lambda i: (i, 0)),   # x rows (streamed)
            pl.BlockSpec((IN, H), lambda i: (0, 0)),    # w1^T   (resident)
            pl.BlockSpec((1, H), lambda i: (0, 0)),     # b1     (resident)
            pl.BlockSpec((H, OUT), lambda i: (0, 0)),   # w2^T   (resident, native OUT)
            pl.BlockSpec((1, OUT), lambda i: (0, 0)),   # b2     (resident)
            pl.BlockSpec((TB, 1), lambda i: (i, 0)),    # time_given rows
        ],
        # Native (TB, OUT) output block: masked stores, but 8x fewer HBM bytes
        # written than a 128-lane zero-padded slab, and no wrapper column slice.
        out_specs=pl.BlockSpec((TB, OUT), lambda i: (i, 0)),
        compiler_params=pltpu.CompilerParams(
            dimension_semantics=("parallel",)),          # shard batch steps on v7x
    )(x, w1t, b1_2d, w2t, b2_2d, time_given)


def reference_forward_f32(x, w1, b1, w2, b2, time_given):
    """Pure f32 reference matching the PyTorch module (eval mode)."""
    h = x @ w1.T + b1
    h = jnp.where(h > 0, h, 0.2 * h)
    h = h * time_given
    return h @ w2.T + b2


def reference_forward_bf16(x, w1, b1, w2, b2, time_given):
    """Reference mirroring the kernel's mixed precision / op ordering."""
    h = jnp.dot(x.astype(jnp.bfloat16), w1.T.astype(jnp.bfloat16),
                preferred_element_type=jnp.float32) + b1
    h = jnp.maximum(h, 0.2 * h)
    y = jnp.dot(h.astype(jnp.bfloat16), w2.T.astype(jnp.bfloat16),
                preferred_element_type=jnp.float32)
    return time_given * y + b2


if __name__ == "__main__":
    # Small shapes consistent with the module: MLP(inpu_dim=32, hidden=64, out_dim=16)
    B, IN, H, OUT = 8, 32, 64, 16
    key = jax.random.PRNGKey(0)
    kx, kt, kw1, kw2, kx2, kt2 = jax.random.split(key, 6)

    x = jax.random.normal(kx, (B, IN), dtype=jnp.float32)
    time_given = jax.random.uniform(kt, (B, 1), dtype=jnp.float32)

    # Deterministic init mirroring PyTorch init_weights():
    initrange = 0.1
    w1 = jax.random.uniform(kw1, (H, IN), minval=-initrange, maxval=initrange,
                            dtype=jnp.float32)
    w2 = jax.random.uniform(kw2, (OUT, H), minval=-initrange, maxval=initrange,
                            dtype=jnp.float32)
    b1 = jnp.zeros((H,), dtype=jnp.float32)
    b2 = jnp.zeros((OUT,), dtype=jnp.float32)

    # One-time parameter preprocessing (transpose / bf16) outside the hot path.
    w1t, b1_2d, w2t, b2_2d = prepare_params(w1, b1, w2, b2)

    out = mlp_forward(x, time_given, w1t, b1_2d, w2t, b2_2d)
    out = jax.block_until_ready(out)
    assert out.shape == (B, OUT)

    # Tight check vs a reference with identical mixed-precision numerics.
    ref_bf16 = reference_forward_bf16(x, w1, b1, w2, b2, time_given)
    assert jnp.allclose(out, ref_bf16, atol=1e-3, rtol=1e-3)

    # Semantic check vs the pure-f32 PyTorch-equivalent reference
    # (bf16 MXU operands => looser tolerance).
    ref_f32 = reference_forward_f32(x, w1, b1, w2, b2, time_given)
    assert jnp.allclose(out, ref_f32, atol=2e-2, rtol=2e-2)

    # Second check at a batch that is NOT a multiple of 8, exercising the
    # no-pad / no-slice path (block == full batch dim, single grid step).
    B2 = 20
    x2 = jax.random.normal(kx2, (B2, IN), dtype=jnp.float32)
    t2 = jax.random.uniform(kt2, (B2, 1), dtype=jnp.float32)
    out2 = jax.block_until_ready(mlp_forward(x2, t2, w1t, b1_2d, w2t, b2_2d))
    assert out2.shape == (B2, OUT)
    assert jnp.allclose(out2, reference_forward_f32(x2, w1, b1, w2, b2, t2),
                        atol=2e-2, rtol=2e-2)

    print("KERNEL_OK")
</pallas_src>

<mosaic_0001>
module attributes {stable_mosaic.version = 11 : i64} {
  func.func @mlp_kernel(%arg0: i32, %arg1: memref<8x32xf32, #tpu.memory_space<vmem>>, %arg2: memref<32x64xbf16, #tpu.memory_space<vmem>>, %arg3: memref<1x64xf32, #tpu.memory_space<vmem>>, %arg4: memref<64x16xbf16, #tpu.memory_space<vmem>>, %arg5: memref<1x16xf32, #tpu.memory_space<vmem>>, %arg6: memref<8x1xf32, #tpu.memory_space<vmem>>, %arg7: memref<8x16xf32, #tpu.memory_space<vmem>>) attributes {dimension_semantics = [#tpu.dimension_semantics<parallel>], iteration_bounds = array<i64: 1>, scalar_prefetch = 0 : i64, scratch_operands = 0 : i64, tpu.core_type = #tpu.core_type<tc>, window_params = [{transform_indices = @transform_0, window_bounds = array<i64: 8, 32>}, {pipeline_mode = #tpu.pipeline_mode<synchronous>, transform_indices = @transform_1, window_bounds = array<i64: 32, 64>}, {pipeline_mode = #tpu.pipeline_mode<synchronous>, transform_indices = @transform_2, window_bounds = array<i64: 1, 64>}, {pipeline_mode = #tpu.pipeline_mode<synchronous>, transform_indices = @transform_3, window_bounds = array<i64: 64, 16>}, {pipeline_mode = #tpu.pipeline_mode<synchronous>, transform_indices = @transform_4, window_bounds = array<i64: 1, 16>}, {transform_indices = @transform_5, window_bounds = array<i64: 8, 1>}, {transform_indices = @transform_6, window_bounds = array<i64: 8, 16>}]} {
    %c0 = arith.constant 0 : index
    %c0_0 = arith.constant 0 : index
    %0 = vector.load %arg1[%c0, %c0_0] : memref<8x32xf32, #tpu.memory_space<vmem>>, vector<8x32xf32>
    %1 = arith.truncf %0 : vector<8x32xf32> to vector<8x32xbf16>
    %c0_1 = arith.constant 0 : index
    %c0_2 = arith.constant 0 : index
    %2 = vector.load %arg2[%c0_1, %c0_2] : memref<32x64xbf16, #tpu.memory_space<vmem>>, vector<32x64xbf16>
    %cst = arith.constant dense<0.000000e+00> : vector<8x64xf32>
    %3 = tpu.matmul %1, %2, %cst {dimension_numbers = #tpu.dot_dimension_numbers<[1], [0], [0], [1], [0, 0, 1, 1], [], []>} : vector<8x32xbf16>, vector<32x64xbf16>, vector<8x64xf32> -> vector<8x64xf32>
    %c0_3 = arith.constant 0 : index
    %c0_4 = arith.constant 0 : index
    %4 = vector.load %arg3[%c0_3, %c0_4] : memref<1x64xf32, #tpu.memory_space<vmem>>, vector<1x64xf32>
    %5 = vector.broadcast %4 : vector<1x64xf32> to vector<8x64xf32>
    %6 = arith.addf %3, %5 : vector<8x64xf32>
    %cst_5 = arith.constant 2.000000e-01 : f32
    %7 = vector.broadcast %cst_5 : f32 to vector<8x64xf32>
    %8 = arith.mulf %7, %6 : vector<8x64xf32>
    %9 = arith.maximumf %6, %8 : vector<8x64xf32>
    %10 = arith.truncf %9 : vector<8x64xf32> to vector<8x64xbf16>
    %c0_6 = arith.constant 0 : index
    %c0_7 = arith.constant 0 : index
    %11 = vector.load %arg4[%c0_6, %c0_7] : memref<64x16xbf16, #tpu.memory_space<vmem>>, vector<64x16xbf16>
    %cst_8 = arith.constant dense<0.000000e+00> : vector<8x16xf32>
    %12 = tpu.matmul %10, %11, %cst_8 {dimension_numbers = #tpu.dot_dimension_numbers<[1], [0], [0], [1], [0, 0, 1, 1], [], []>} : vector<8x64xbf16>, vector<64x16xbf16>, vector<8x16xf32> -> vector<8x16xf32>
    %c0_9 = arith.constant 0 : index
    %c0_10 = arith.constant 0 : index
    %13 = vector.load %arg6[%c0_9, %c0_10] : memref<8x1xf32, #tpu.memory_space<vmem>>, vector<8x1xf32>
    %14 = vector.broadcast %13 : vector<8x1xf32> to vector<8x16xf32>
    %15 = arith.mulf %14, %12 : vector<8x16xf32>
    %c0_11 = arith.constant 0 : index
    %c0_12 = arith.constant 0 : index
    %16 = vector.load %arg5[%c0_11, %c0_12] : memref<1x16xf32, #tpu.memory_space<vmem>>, vector<1x16xf32>
    %17 = vector.broadcast %16 : vector<1x16xf32> to vector<8x16xf32>
    %18 = arith.addf %15, %17 : vector<8x16xf32>
    %c0_13 = arith.constant 0 : index
    %c0_14 = arith.constant 0 : index
    %19 = vector.load %arg7[%c0_13, %c0_14] : memref<8x16xf32, #tpu.memory_space<vmem>>, vector<8x16xf32>
    tpu.vector_store %arg7[%c0_13, %c0_14], %18 {strides = array<i32>} : memref<8x16xf32, #tpu.memory_space<vmem>>, vector<8x16xf32>,
    return
  }
  func.func @transform_0(%arg0: i32) -> (i32, i32) {
    %c0_i32 = arith.constant 0 : i32
    %c0_i32_0 = arith.constant 0 : i32
    return %arg0, %c0_i32 : i32, i32
  }
  func.func @transform_1(%arg0: i32) -> (i32, i32) {
    %c0_i32 = arith.constant 0 : i32
    %c0_i32_0 = arith.constant 0 : i32
    %c0_i32_1 = arith.constant 0 : i32
    return %c0_i32, %c0_i32_0 : i32, i32
  }
  func.func @transform_2(%arg0: i32) -> (i32, i32) {
    %c0_i32 = arith.constant 0 : i32
    %c0_i32_0 = arith.constant 0 : i32
    %c0_i32_1 = arith.constant 0 : i32
    return %c0_i32, %c0_i32_0 : i32, i32
  }
  func.func @transform_3(%arg0: i32) -> (i32, i32) {
    %c0_i32 = arith.constant 0 : i32
    %c0_i32_0 = arith.constant 0 : i32
    %c0_i32_1 = arith.constant 0 : i32
    return %c0_i32, %c0_i32_0 : i32, i32
  }
  func.func @transform_4(%arg0: i32) -> (i32, i32) {
    %c0_i32 = arith.constant 0 : i32
    %c0_i32_0 = arith.constant 0 : i32
    %c0_i32_1 = arith.constant 0 : i32
    return %c0_i32, %c0_i32_0 : i32, i32
  }
  func.func @transform_5(%arg0: i32) -> (i32, i32) {
    %c0_i32 = arith.constant 0 : i32
    %c0_i32_0 = arith.constant 0 : i32
    return %arg0, %c0_i32 : i32, i32
  }
  func.func @transform_6(%arg0: i32) -> (i32, i32) {
    %c0_i32 = arith.constant 0 : i32
    %c0_i32_0 = arith.constant 0 : i32
    return %arg0, %c0_i32 : i32, i32
  }
}

</mosaic_0001>

<bundles_post_ra>
// kernel: mlp_forward.1
= control target key start
LH: loop header
LB: loop body
LE: loop exit
PB: predicated region body
PF: predicated region fallthrough
CT: control target
= control target key end

     0   :  { %v277_v1 = vmov 0.0   ;;  %vm278_vm0 = vmmov 0   ;;  %vm50_vm1 = vcmask 261120   ;;  %s358_s0 = inlined_call_operand.vmem [shape: f32[8,32], index: 0, kind: input, shape index: {}]   ;;  %s359_s1 = inlined_call_operand.vmem [shape: bf16[32,64], index: 1, kind: input, shape index: {}]   ;;  %s360_s2 = inlined_call_operand.vmem [shape: f32[1,64], index: 2, kind: input, shape index: {}]   ;;  %s361_s3 = inlined_call_operand.vmem [shape: bf16[64,16], index: 3, kind: input, shape index: {}]   ;;  %s362_s4 = inlined_call_operand.vmem [shape: f32[1,16], index: 4, kind: input, shape index: {}]   ;;  %s363_s5 = inlined_call_operand.vmem [shape: f32[8,1], index: 5, kind: input, shape index: {}]   ;;  %s364_s6 = inlined_call_operand.hbm [shape: f32[8,16], index: 6, kind: output, shape index: {}]  }
   0x1   :  { %v247_v0 = vld [vmem:[%s359_s1] sm:$0xff]   ;;  %222 = vmatprep.subr.bf16.mxu0 %v277_v1  ;;  %v248_v2 = vld [vmem:[%s359_s1 + $0x8] sm:$0xff]   ;;  %230 = vmatprep.subr.bf16.mxu1 %v277_v1 }
   0x2   :  { %223 = vmatpush3.bf16.msra.mxu0 %v247_v0  ;;  %226 = vmatprep.mubr.msk.bf16.mxu0 %vm278_vm0, %v277_v1  ;;  %v25_v3 = vld [vmem:[%s358_s0] sm:$0xff]  ;;  %v250_v5 = vld [vmem:[%s361_s3 + $0x8] sm:$0xff]  }
   0x3   :  { %224 = vmatprep.subr.bf16.mxu0 %v277_v1  ;;  %v249_v4 = vld [vmem:[%s361_s3] sm:$0xff]   ;;  %238 = vmatprep.mubr.msk.bf16.mxu1 %vm278_vm0, %v277_v1  ;;  %v26_v6 = vpack.c.bf16 %v25_v3, %v25_v3 }
   0x4   :  { %231 = vmatpush3.bf16.msra.mxu1 %v249_v4 }
   0x5   :  { %232 = vmatprep.subr.bf16.mxu1 %v277_v1 }
   0x6   :  { %225 = vmatpush3.bf16.msra.mxu0 %v248_v2 }
   0x7   :  { %11 = vsyncpa [#allocation3], 0  ;;  %v251_v7 = vld [vmem:[%s361_s3 + $0x10] sm:$0xff]   ;;  %v252_v8 = vld [vmem:[%s361_s3 + $0x18] sm:$0xff]   ;;  %v279_v10 = vmov 0   ;;  %vm129_vm2 = vcmask 523264  }
   0x8   :  { %233 = vmatpush3.bf16.msra.mxu1 %v250_v5  ;;  %v173_v9 = vld [vmem:[%s363_s5] sm:$0xff]  ;;  %246 = vset.pattern.permute.xlu0 %v279_v10  ;;  %s280_s13 = smov [#allocation2]   ;;  %vm188_vm3 = vcmask 130048  }
   0x9   :  { %227 = vmatmul.mubr.msk.bf16.vlgmr.msra.gmra.mrb[0].mxu0 %vm50_vm1, %v26_v6  ;;  %234 = vmatprep.subr.bf16.mxu1 %v277_v1  ;;  %v204_v11 = vld [vmem:[%s360_s2] ss:$0 sm:$0xff]  ;;  %s196_s14 = sshll.u32 %s280_s13, 4  ;;  %s197_s14 = int_to_ptr.vmem [resolvable:$true] %s196_s14 }
   0xa   :  { %176 = vperm.xlu0 %246, %v173_v9   ;;  %v213_v22 = vld [vmem:[%s362_s4] ss:$0 sm:$0xff]  ;;  %s253_s2 = scalar_lea.vmem %s197_s14, 128  ;;  %p258_p1 = scmp.lt.s32.totalorder %s197_s14, %s197_s14 }
   0xb   :  { %p254_p0 = scmp.ne.s32.totalorder %s197_s14, %s253_s2  ;;  %p259_p2 = scmp.lt.s32.totalorder %s253_s2, %s253_s2 }
   0xc   :  { %235 = vmatpush3.bf16.msra.mxu1 %v251_v7 }
   0xd   :  { %236 = vmatprep.subr.bf16.mxu1 %v277_v1  ;;  %p260_p3 = por %p259_p2, %p258_p1 }
   0xf   :  { %p261_p4 = pnand %p260_p3, %p254_p0 }
  0x10   :  { %237 = vmatpush3.bf16.msra.mxu1 %v252_v8 }
  0x89   :  { %v177_v20 = vpop.permute.xlu0 %176 }
  0xdc   :  { %v88_v12 = vpop.f32.mrb[0].mxu0 }
  0xdd   :  { %v89_v13 = vadd.f32 %v204_v11, %v88_v12  ;;  %v228_v14 = vpop.f32.mrb[1].mxu0 }
  0xde   :  { %v91_v15 = vpop.f32.mrb[2].mxu0 }
  0xdf   :  { %v94_v16 = vmul.f32 0.2, %v89_v13  ;;  %v229_v17 = vpop.f32.mrb[3].mxu0 }
  0xe1   :  { %v95_v18 = vmax.f32 %v89_v13, %v94_v16 }
  0xe3   :  { %v96_v19 = vpack.c.bf16 %v95_v18, %v95_v18 }
  0xe5   :  { %239 = vmatmul.mubr.msk.bf16.vlgmr.msra.gmra.mrb[0].mxu1 %vm129_vm2, %v96_v19 }
 0x1b8   :  { %v167_v21 = vpop.f32.mrb[0].mxu1 }
 0x1b9   :  { %v179_v23 = vmul.f32 %v177_v20, %v167_v21  ;;  %v240_v24 = vpop.f32.mrb[1].mxu1 }
 0x1ba   :  { %v170_v25 = vpop.f32.mrb[2].mxu1 }
 0x1bb   :  { %v187_v26 = vadd.f32 %v213_v22, %v179_v23  ;;  %v241_v27 = vpop.f32.mrb[3].mxu1 }
 0x1bd   :  { %189 = vst.msk [vmem:[#allocation2] sm:$0xff] %vm188_vm3, %v187_v26 }
 0x1be   :  { %264 = shalt.err (!%p261_p4)
}
 0x1bf   :  { %s265_s4 = scalar_lea.hbm %s364_s6, 128 }
 0x1c0   :  { %p266_p5 = scmp.ne.s32.totalorder %s364_s6, %s265_s4  ;;  %p269_p6 = scmp.lt.u32.totalorder %s265_s4, %s364_s6 }
 0x1c2   :  { %p271_p7 = pnand %p269_p6, %p266_p5 }
 0x1c4   :  { %274 = shalt.err (!%p271_p7)
}
 0x1c5   :  { %199 = dma.vmem_to_hbm [thread:$0]  %s197_s14, 128, %s364_s6, [#allocation3]  }
 0x1c6   :  { %275 = dma.done.wait [#allocation3], 128  }
 0x1c7   :  { %276 = vsyncadd [#allocation3], 4294967168 }
 0x1c8   :  { %203 = vsyncpa [#allocation3], 1 }

</bundles_post_ra>
